<compile_context>
chip_gen: v7x
topology: tpu7x:2x2x1
jax: 0.10.0
libtpu: 0.0.40
codegen_flags: <defaults>
</compile_context>

<pallas_src>
import functools

import jax
import jax.numpy as jnp
from jax.experimental import pallas as pl
from jax.experimental.pallas import tpu as pltpu

KERNEL_SIZE = 8
STRIDE = 1
PADDING = 0

_TINY_INPUT_BYTES = 1 << 20  # below this, a fused XLA op beats a Pallas launch


def _round_up(n, m):
    return ((n + m - 1) // m) * m


def _hw_params():
    """VMEM limit / block budget / min grid steps from the chip generation."""
    vmem_bytes = 64 * 1024 * 1024
    try:
        vmem_bytes = int(pltpu.get_tpu_info().vmem_capacity_bytes)
    except Exception:
        pass
    if vmem_bytes >= 96 * 1024 * 1024:
        # v5e / v6e: 128 MiB VMEM, single TensorCore per chip.
        return {"vmem_limit": 96 * 1024 * 1024,
                "block_budget": 64 * 1024 * 1024,
                "min_steps": 1}
    # v7x-class: 64 MiB VMEM, 2 TensorCores share HBM bandwidth.
    return {"vmem_limit": 32 * 1024 * 1024,
            "block_budget": 20 * 1024 * 1024,
            "min_steps": 2}


def _pick_tiles(B, L, L_out, C, itemsize, squeeze_l, budget, min_steps):
    """Pick (TB, TC) from a padded-tile VMEM estimate."""
    smult = max(8, 32 // itemsize)  # sublane multiple: f32->8, bf16->16, int8->32

    def block_bytes(tb, tc):
        tc_p = _round_up(tc, 128)
        b = 2 * tb * _round_up(L, smult) * tc_p * itemsize           # in (double-buffered)
        if squeeze_l:
            b += 2 * _round_up(tb, smult) * tc_p * itemsize          # out 2-D (double-buffered)
        else:
            b += 2 * tb * _round_up(L_out, smult) * tc_p * itemsize  # out 3-D (double-buffered)
        b += 2 * tb * _round_up(L_out, 8) * tc_p * 4                 # f32 acc + one upcast slice
        return b

    # Channel tile: prefer full C (fully contiguous HBM reads per batch row);
    # tile only if even a single batch row at full C exceeds the budget.
    TC = C
    if block_bytes(1, C) > budget and C > 128:
        per_lane_group = block_bytes(1, 128)
        n128 = max(1, budget // per_lane_group)
        TC = min(int(n128) * 128, C)

    # Batch tile: largest TB that fits the budget.
    per_row = block_bytes(1, TC)
    TB = max(1, int(budget // per_row))
    TB = min(TB, B)
    if squeeze_l and TB < B:
        # 2-D output block (TB, TC): keep TB sublane-aligned unless it spans all of B.
        TB = min(B, max(smult, (TB // smult) * smult))

    # On 2-TensorCore parts keep >= min_steps grid steps so both cores get work.
    num_b, num_c = pl.cdiv(B, TB), pl.cdiv(C, TC)
    if num_b * num_c < min_steps:
        if B >= 2:
            cand = pl.cdiv(B, min_steps)
            if squeeze_l:
                cand = _round_up(cand, smult)
            if 0 < cand < B:
                TB = cand
                num_b = pl.cdiv(B, TB)
        if num_b * num_c < min_steps and C >= 2 * 128:
            TC = _round_up(pl.cdiv(C, min_steps), 128)

    return int(TB), int(TC)


def _mean_hash_kernel(x_ref, o_ref, *, squeeze_l):
    # x_ref: (TB, L, TC)
    # o_ref: (TB, TC)            when squeeze_l (L_out == 1)
    #        (TB, L_out, TC)     otherwise (lane-dense; wrapper does the (0,2,1) reorder)
    l = x_ref.shape[1]
    l_out = l - KERNEL_SIZE + 1
    # Accumulate in f32, upcasting one window slice at a time (no full-block
    # f32 temporary); init with the first slice (no zero-fill).
    acc = x_ref[:, 0:l_out, :].astype(jnp.float32)
    for k in range(1, KERNEL_SIZE):
        acc = acc + x_ref[:, k:k + l_out, :].astype(jnp.float32)
    acc = acc * (1.0 / KERNEL_SIZE)
    if squeeze_l:
        o_ref[...] = acc[:, 0, :].astype(o_ref.dtype)
    else:
        o_ref[...] = acc.astype(o_ref.dtype)


def mean_hashing(x, *, force_pallas=False):
    """x: (B, L, C) float array. Matches the PyTorch MeanHashing forward."""
    B, L, C = x.shape
    assert L >= KERNEL_SIZE, "sequence length must be >= pooling kernel size"
    L_out = (L + 2 * PADDING - KERNEL_SIZE) // STRIDE + 1
    itemsize = jnp.dtype(x.dtype).itemsize
    squeeze_l = (L_out == 1)

    # Tiny-input fallback: Pallas launch + per-step overhead dwarfs moving a
    # few KB; a fused XLA op is strictly faster below this threshold.
    if not force_pallas and B * L * C * itemsize < _TINY_INPUT_BYTES:
        acc = x[:, 0:L_out, :].astype(jnp.float32)
        for k in range(1, KERNEL_SIZE):
            acc = acc + x[:, k:k + L_out, :].astype(jnp.float32)
        pooled = (acc * (1.0 / KERNEL_SIZE)).astype(x.dtype)      # (B, L_out, C)
        return jnp.squeeze(jnp.transpose(pooled, (0, 2, 1)))      # PyTorch layout + squeeze

    hw = _hw_params()
    TB, TC = _pick_tiles(B, L, L_out, C, itemsize, squeeze_l,
                         hw["block_budget"], hw["min_steps"])
    num_b, num_c = pl.cdiv(B, TB), pl.cdiv(C, TC)

    if squeeze_l:
        out_shape = jax.ShapeDtypeStruct((B, C), x.dtype)
        out_spec = pl.BlockSpec((TB, TC), lambda b, c: (b, c))
    else:
        # Lane-dense kernel output (C on lanes); reorder to (B, C, L_out) in wrapper.
        out_shape = jax.ShapeDtypeStruct((B, L_out, C), x.dtype)
        out_spec = pl.BlockSpec((TB, L_out, TC), lambda b, c: (b, 0, c))

    in_bytes = B * L * C * itemsize
    out_bytes = B * L_out * C * itemsize
    cost = pl.CostEstimate(flops=KERNEL_SIZE * B * L_out * C,
                           transcendentals=0,
                           bytes_accessed=in_bytes + out_bytes)

    kernel = functools.partial(_mean_hash_kernel, squeeze_l=squeeze_l)
    pooled = pl.pallas_call(
        kernel,
        out_shape=out_shape,
        grid=(num_b, num_c),
        in_specs=[pl.BlockSpec((TB, L, TC), lambda b, c: (b, 0, c))],
        out_specs=out_spec,
        compiler_params=pltpu.CompilerParams(
            dimension_semantics=("parallel", "parallel"),
            vmem_limit_bytes=hw["vmem_limit"]),
        cost_estimate=cost,
    )(x)

    if squeeze_l:
        # pooled (B, C) == squeeze of PyTorch's (B, C, 1); squeeze also drops B==1.
        return jnp.squeeze(pooled)
    # Reorder to PyTorch (B, C, L_out), then .squeeze().
    return jnp.squeeze(jnp.transpose(pooled, (0, 2, 1)))


def _reference(x):
    # Pure-JAX reference of AvgPool1d(k=8, s=1, p=0) on x.permute(0, 2, 1), then .squeeze()
    B, L, C = x.shape
    L_out = L - KERNEL_SIZE + 1
    windows = jnp.stack(
        [x[:, k:k + L_out, :].astype(jnp.float32) for k in range(KERNEL_SIZE)], axis=0)
    pooled = jnp.mean(windows, axis=0).astype(x.dtype)            # (B, L_out, C)
    return jnp.squeeze(jnp.transpose(pooled, (0, 2, 1)))          # (B, C, L_out).squeeze()


if __name__ == "__main__":
    key = jax.random.PRNGKey(0)

    # Primary case (module's intended use): L == kernel_size -> output (B, C).
    B, L, C = 2, 8, 32
    x = jax.random.normal(key, (B, L, C), dtype=jnp.float32)
    out = jax.block_until_ready(mean_hashing(x, force_pallas=True))
    ref = _reference(x)
    assert out.shape == ref.shape, (out.shape, ref.shape)
    assert jnp.allclose(out, ref, atol=1e-5, rtol=1e-5)

    # Secondary case: L_out > 1 exercises the lane-dense output + wrapper reorder.
    x2 = jax.random.normal(jax.random.PRNGKey(1), (2, 16, 128), dtype=jnp.float32)
    out2 = jax.block_until_ready(mean_hashing(x2, force_pallas=True))
    ref2 = _reference(x2)
    assert out2.shape == ref2.shape, (out2.shape, ref2.shape)
    assert jnp.allclose(out2, ref2, atol=1e-5, rtol=1e-5)

    # Tiny-input auto-fallback path (no Pallas launch) must match too.
    out3 = jax.block_until_ready(mean_hashing(x))
    assert jnp.allclose(out3, ref, atol=1e-5, rtol=1e-5)

    print("KERNEL_OK")
</pallas_src>

<mosaic_0001>
module attributes {stable_mosaic.version = 11 : i64} {
  func.func @_mean_hash_kernel(%arg0: i32, %arg1: i32, %arg2: memref<2x8x32xf32, #tpu.memory_space<vmem>>, %arg3: memref<2x32xf32, #tpu.memory_space<vmem>>) attributes {dimension_semantics = [#tpu.dimension_semantics<parallel>, #tpu.dimension_semantics<parallel>], iteration_bounds = array<i64: 1, 1>, scalar_prefetch = 0 : i64, scratch_operands = 0 : i64, tpu.core_type = #tpu.core_type<tc>, window_params = [{transform_indices = @transform_0, window_bounds = array<i64: 2, 8, 32>}, {transform_indices = @transform_1, window_bounds = array<i64: 2, 32>}]} {
    %c0 = arith.constant 0 : index
    %c0_0 = arith.constant 0 : index
    %c0_1 = arith.constant 0 : index
    %0 = vector.load %arg2[%c0, %c0_0, %c0_1] : memref<2x8x32xf32, #tpu.memory_space<vmem>>, vector<2x1x32xf32>
    %c0_2 = arith.constant 0 : index
    %c1 = arith.constant 1 : index
    %c0_3 = arith.constant 0 : index
    %1 = vector.load %arg2[%c0_2, %c1, %c0_3] : memref<2x8x32xf32, #tpu.memory_space<vmem>>, vector<2x1x32xf32>
    %2 = arith.addf %0, %1 : vector<2x1x32xf32>
    %c0_4 = arith.constant 0 : index
    %c2 = arith.constant 2 : index
    %c0_5 = arith.constant 0 : index
    %3 = vector.load %arg2[%c0_4, %c2, %c0_5] : memref<2x8x32xf32, #tpu.memory_space<vmem>>, vector<2x1x32xf32>
    %4 = arith.addf %2, %3 : vector<2x1x32xf32>
    %c0_6 = arith.constant 0 : index
    %c3 = arith.constant 3 : index
    %c0_7 = arith.constant 0 : index
    %5 = vector.load %arg2[%c0_6, %c3, %c0_7] : memref<2x8x32xf32, #tpu.memory_space<vmem>>, vector<2x1x32xf32>
    %6 = arith.addf %4, %5 : vector<2x1x32xf32>
    %c0_8 = arith.constant 0 : index
    %c4 = arith.constant 4 : index
    %c0_9 = arith.constant 0 : index
    %7 = vector.load %arg2[%c0_8, %c4, %c0_9] : memref<2x8x32xf32, #tpu.memory_space<vmem>>, vector<2x1x32xf32>
    %8 = arith.addf %6, %7 : vector<2x1x32xf32>
    %c0_10 = arith.constant 0 : index
    %c5 = arith.constant 5 : index
    %c0_11 = arith.constant 0 : index
    %9 = vector.load %arg2[%c0_10, %c5, %c0_11] : memref<2x8x32xf32, #tpu.memory_space<vmem>>, vector<2x1x32xf32>
    %10 = arith.addf %8, %9 : vector<2x1x32xf32>
    %c0_12 = arith.constant 0 : index
    %c6 = arith.constant 6 : index
    %c0_13 = arith.constant 0 : index
    %11 = vector.load %arg2[%c0_12, %c6, %c0_13] : memref<2x8x32xf32, #tpu.memory_space<vmem>>, vector<2x1x32xf32>
    %12 = arith.addf %10, %11 : vector<2x1x32xf32>
    %c0_14 = arith.constant 0 : index
    %c7 = arith.constant 7 : index
    %c0_15 = arith.constant 0 : index
    %13 = vector.load %arg2[%c0_14, %c7, %c0_15] : memref<2x8x32xf32, #tpu.memory_space<vmem>>, vector<2x1x32xf32>
    %14 = arith.addf %12, %13 : vector<2x1x32xf32>
    %cst = arith.constant 1.250000e-01 : f32
    %15 = vector.broadcast %cst : f32 to vector<2x1x32xf32>
    %16 = arith.mulf %14, %15 : vector<2x1x32xf32>
    %17 = vector.shape_cast %16 : vector<2x1x32xf32> to vector<2x32xf32>
    %c0_16 = arith.constant 0 : index
    %c0_17 = arith.constant 0 : index
    %18 = vector.load %arg3[%c0_16, %c0_17] : memref<2x32xf32, #tpu.memory_space<vmem>>, vector<2x32xf32>
    tpu.vector_store %arg3[%c0_16, %c0_17], %17 {strides = array<i32>} : memref<2x32xf32, #tpu.memory_space<vmem>>, vector<2x32xf32>,
    return
  }
  func.func @transform_0(%arg0: i32, %arg1: i32) -> (i32, i32, i32) {
    %c0_i32 = arith.constant 0 : i32
    %c0_i32_0 = arith.constant 0 : i32
    return %arg0, %c0_i32, %arg1 : i32, i32, i32
  }
  func.func @transform_1(%arg0: i32, %arg1: i32) -> (i32, i32) {
    %c0_i32 = arith.constant 0 : i32
    return %arg0, %arg1 : i32, i32
  }
}

</mosaic_0001>

<bundles_post_ra>
// kernel: tpu_custom_call.1
= control target key start
LH: loop header
LB: loop body
LE: loop exit
PB: predicated region body
PF: predicated region fallthrough
CT: control target
= control target key end

     0   :  { %6 = vsyncpa [#allocation3], 0  ;;  %s168_s0 = inlined_call_operand.hbm [shape: f32[2,8,32], index: 0, kind: input, shape index: {}]   ;;  %s169_s1 = inlined_call_operand.hbm [shape: f32[2,32], index: 1, kind: output, shape index: {}]  }
   0x1   :  { %7 = vsyncpa [#allocation4], 0  ;;  %s130_s6 = smov [#allocation2]   ;;  %s82_s10 = scalar_lea.hbm %s168_s0, 256 }
   0x2   :  { %s13_s7 = sshll.u32 %s130_s6, 4  ;;  %p83_p0 = scmp.ne.s32.totalorder %s168_s0, %s82_s10  ;;  %s14_s7 = int_to_ptr.vmem [resolvable:$true] %s13_s7 }
   0x3   :  { %p86_p1 = scmp.lt.u32.totalorder %s82_s10, %s168_s0 }
   0x5   :  { %p88_p2 = pnand %p86_p1, %p83_p0 }
   0x7   :  { %91 = shalt.err (!%p88_p2)
}
   0x8   :  { %s92_s15 = scalar_lea.vmem %s14_s7, 256  ;;  %p97_p4 = scmp.lt.s32.totalorder %s14_s7, %s14_s7 }
   0x9   :  { %p93_p3 = scmp.ne.s32.totalorder %s14_s7, %s92_s15  ;;  %p98_p5 = scmp.lt.s32.totalorder %s92_s15, %s92_s15 }
   0xb   :  { %p99_p6 = por %p98_p5, %p97_p4 }
   0xd   :  { %p100_p7 = pnand %p99_p6, %p93_p3 }
   0xf   :  { %103 = shalt.err (!%p100_p7)
}
  0x10   :  { %s131_s16 = smov 128   ;;  %s132_s17 = smov 8  }
  0x11   :  { %19 = dma.hbm_to_vmem [thread:$0]  %s168_s0, 256, %s14_s7, [#allocation3], %s131_s16, %s131_s16, %s132_s17  }
  0x12   :  { %126 = dma.done.wait [#allocation3], 256  }
  0x13   :  { %127 = vsyncadd [#allocation3], 4294967040  ;;  %v23_v0 = vld [vmem:[#allocation2] sm:$0x1]  ;;  %v24_v1 = vld [vmem:[#allocation2 + $0x8] sm:$0x1] }
  0x14   :  { %v25_v2 = vld [vmem:[#allocation2 + $0x1] sm:$0x1]  ;;  %v26_v3 = vld [vmem:[#allocation2 + $0x9] sm:$0x1]  ;;  %v29_v5 = vld [vmem:[#allocation2 + $0x2] sm:$0x1] }
  0x15   :  { %v27_v4 = vadd.f32 %v25_v2, %v23_v0  ;;  %v30_v6 = vld [vmem:[#allocation2 + $0xa] sm:$0x1]  ;;  %v28_v7 = vadd.f32 %v26_v3, %v24_v1  ;;  %v33_v8 = vld [vmem:[#allocation2 + $0x3] sm:$0x1]  ;;  %v34_v10 = vld [vmem:[#allocation2 + $0xb] sm:$0x1] }
  0x16   :  { %v37_v12 = vld [vmem:[#allocation2 + $0x4] sm:$0x1]  ;;  %v38_v14 = vld [vmem:[#allocation2 + $0xc] sm:$0x1]  ;;  %v41_v16 = vld [vmem:[#allocation2 + $0x5] sm:$0x1] }
  0x17   :  { %v31_v9 = vadd.f32 %v29_v5, %v27_v4  ;;  %v32_v11 = vadd.f32 %v30_v6, %v28_v7  ;;  %v42_v18 = vld [vmem:[#allocation2 + $0xd] sm:$0x1]  ;;  %v45_v20 = vld [vmem:[#allocation2 + $0x6] sm:$0x1]  ;;  %v46_v22 = vld [vmem:[#allocation2 + $0xe] sm:$0x1] }
  0x18   :  { %v49_v24 = vld [vmem:[#allocation2 + $0x7] sm:$0x1]  ;;  %v50_v26 = vld [vmem:[#allocation2 + $0xf] sm:$0x1]  ;;  %s133_s0 = smov [#allocation5]   ;;  %vm58_vm0 = vcmask 1041409  }
  0x19   :  { %v35_v13 = vadd.f32 %v33_v8, %v31_v9  ;;  %v36_v15 = vadd.f32 %v34_v10, %v32_v11  ;;  %s69_s20 = sshll.u32 %s133_s0, 4  ;;  %vm61_vm1 = vcmask 254976   ;;  %s70_s20 = int_to_ptr.vmem [resolvable:$true] %s69_s20 }
  0x1a   :  { %s104_s21 = scalar_lea.vmem %s70_s20, 32  ;;  %p109_p9 = scmp.lt.s32.totalorder %s70_s20, %s70_s20 }
  0x1b   :  { %v39_v17 = vadd.f32 %v37_v12, %v35_v13  ;;  %v40_v19 = vadd.f32 %v38_v14, %v36_v15  ;;  %p105_p8 = scmp.ne.s32.totalorder %s70_s20, %s104_s21  ;;  %p110_p10 = scmp.lt.s32.totalorder %s104_s21, %s104_s21 }
  0x1d   :  { %v43_v21 = vadd.f32 %v41_v16, %v39_v17  ;;  %v44_v23 = vadd.f32 %v42_v18, %v40_v19  ;;  %p111_p11 = por %p110_p10, %p109_p9 }
  0x1f   :  { %v47_v25 = vadd.f32 %v45_v20, %v43_v21  ;;  %v48_v27 = vadd.f32 %v46_v22, %v44_v23  ;;  %p112_p12 = pnand %p111_p11, %p105_p8 }
  0x21   :  { %v51_v28 = vadd.f32 %v49_v24, %v47_v25  ;;  %v52_v29 = vadd.f32 %v50_v26, %v48_v27 }
  0x23   :  { %v53_v30 = vmul.f32 0.125, %v51_v28  ;;  %v54_v31 = vmul.f32 0.125, %v52_v29 }
  0x25   :  { %v57_v32 = vrot.slane %v54_v31, 7 }
  0x27   :  { %v59_v33 = vsel %vm58_vm0, %v57_v32, %v53_v30 }
  0x28   :  { %62 = vst.msk [vmem:[#allocation5] sm:$0x3] %vm61_vm1, %v59_v33 }
  0x29   :  { %115 = shalt.err (!%p112_p12)
}
  0x2a   :  { %s116_s24 = scalar_lea.hbm %s169_s1, 32 }
  0x2b   :  { %p117_p13 = scmp.ne.s32.totalorder %s169_s1, %s116_s24  ;;  %p120_p0 = scmp.lt.u32.totalorder %s116_s24, %s169_s1 }
  0x2d   :  { %p122_p1 = pnand %p120_p0, %p117_p13 }
  0x2f   :  { %125 = shalt.err (!%p122_p1)
}
  0x30   :  { %72 = dma.vmem_to_hbm [thread:$0]  %s70_s20, 32, %s169_s1, [#allocation4]  }
  0x31   :  { %128 = dma.done.wait [#allocation4], 32  }
  0x32   :  { %129 = vsyncadd [#allocation4], 4294967264 }
  0x33   :  { %76 = vsyncpa [#allocation3], 1 }
  0x34   :  { %77 = vsyncpa [#allocation4], 1 }

</bundles_post_ra>
